<compile_context>
chip_gen: v5e
topology: v5e:2x2
jax: 0.10.0
libtpu: 0.0.40
codegen_flags: <defaults>
</compile_context>

<pallas_src>
import math

import jax
import jax.numpy as jnp
from jax.experimental import pallas as pl
from jax.experimental.pallas import tpu as pltpu

LANE = 128
SUBLANE = 8
_MIB = 1024 * 1024


def _round_up(x, m):
    return ((x + m - 1) // m) * m


def _cdiv(a, b):
    return (a + b - 1) // b


def _maybe_buffered_spec(block_shape, index_map, buffer_count):
    """BlockSpec with an explicit pipeline buffer count; fall back cleanly."""
    buffered = getattr(pl, "Buffered", None)
    if buffered is not None:
        try:
            return pl.BlockSpec(block_shape, index_map,
                                pipeline_mode=buffered(buffer_count))
        except TypeError:
            pass
    return pl.BlockSpec(block_shape, index_map)


# --------------------------------------------------------------------------
# Kernel
# --------------------------------------------------------------------------
def _ran_cell_kernel(x_ref, h0_ref, c0_ref, wx_ref, wh_ref, b_ref,
                     h1_ref, c1_ref):
    cdt = wx_ref.dtype
    x = x_ref[...].astype(cdt)
    h0 = h0_ref[...].astype(cdt)

    # f / i gate pre-activations: x and h0 contributions, f32 MXU accumulation.
    f = (jnp.dot(x, wx_ref[0], preferred_element_type=jnp.float32)
         + jnp.dot(h0, wh_ref[0], preferred_element_type=jnp.float32)
         + b_ref[0])
    i = (jnp.dot(x, wx_ref[1], preferred_element_type=jnp.float32)
         + jnp.dot(h0, wh_ref[1], preferred_element_type=jnp.float32)
         + b_ref[1])
    # Content projection: x only (no hidden / bias term in the RAN cell).
    wc = jnp.dot(x, wx_ref[2], preferred_element_type=jnp.float32)

    c0 = c0_ref[...]
    c1 = jax.nn.sigmoid(i) * wc + jax.nn.sigmoid(f) * jnp.tanh(c0)
    h1 = jnp.tanh(c1)

    c1_ref[...] = c1.astype(c1_ref.dtype)
    h1_ref[...] = h1.astype(h1_ref.dtype)


# --------------------------------------------------------------------------
# One-time parameter packing (hoisted out of the per-step path)
# --------------------------------------------------------------------------
def pack_ran_params(weight_ih, weight_hh, weight_ic, bias_h, *,
                    compute_dtype=jnp.bfloat16, block_h=512):
    """Pack RANCell weights into lane-padded, gate-major slabs (do this once)."""
    input_size, two_h = weight_ih.shape
    hidden = two_h // 2

    block_h = _round_up(block_h, LANE)
    dp = _round_up(input_size, LANE)          # padded contraction dim for x
    hk = _round_up(hidden, LANE)              # padded contraction dim for h0
    n_h = _cdiv(hk, block_h)                  # gate-column tiles
    th = _round_up(_cdiv(hk, n_h), LANE)      # per-tile gate columns
    hp = n_h * th                             # padded output hidden size

    wx = jnp.zeros((3, dp, hp), jnp.float32)
    wx = wx.at[0, :input_size, :hidden].set(weight_ih[:, :hidden])   # f <- x
    wx = wx.at[1, :input_size, :hidden].set(weight_ih[:, hidden:])   # i <- x
    wx = wx.at[2, :input_size, :hidden].set(weight_ic)               # wc <- x
    wx = wx.astype(compute_dtype)

    wh = jnp.zeros((2, hk, hp), jnp.float32)
    wh = wh.at[0, :hidden, :hidden].set(weight_hh[:, :hidden])       # f <- h0
    wh = wh.at[1, :hidden, :hidden].set(weight_hh[:, hidden:])       # i <- h0
    wh = wh.astype(compute_dtype)

    b = jnp.zeros((2, 1, hp), jnp.float32)
    b = b.at[0, 0, :hidden].set(bias_h[:hidden])
    b = b.at[1, 0, :hidden].set(bias_h[hidden:])

    return dict(wx=wx, wh=wh, b=b, input_size=input_size, hidden_size=hidden,
                dp=dp, hk=hk, hp=hp, th=th, n_h=n_h)


# --------------------------------------------------------------------------
# Forward wrapper
# --------------------------------------------------------------------------
def ran_cell_forward(input_, h_0, c_0, params, *, block_b=256,
                     h1_dtype=jnp.float32):
    """Pallas-backed RANCell forward. Returns (h_1, c_1) of shape (B, H)."""
    wx, wh, b = params["wx"], params["wh"], params["b"]
    input_size, hidden = params["input_size"], params["hidden_size"]
    dp, hk, hp = params["dp"], params["hk"], params["hp"]
    th, n_h = params["th"], params["n_h"]

    batch = input_.shape[0]

    # Batch tiling: sublane-aligned, >= 2 tiles when batch allows (so the
    # "parallel" axis can shard across v7x's two TensorCores), minimal padding.
    bp = _round_up(batch, SUBLANE)
    n_b = max(_cdiv(bp, block_b), 2 if bp >= 2 * SUBLANE else 1)
    tb = _round_up(_cdiv(bp, n_b), SUBLANE)
    bp = n_b * tb

    def pad2(a, rows, cols, dtype):
        a = a.astype(dtype)
        if rows or cols:
            a = jnp.pad(a, ((0, rows), (0, cols)))
        return a

    xp = pad2(input_, bp - batch, dp - input_size, wx.dtype)
    h0p = pad2(h_0, bp - batch, hk - hidden, wh.dtype)
    c0p = pad2(c_0, bp - batch, hp - hidden, jnp.float32)   # keep c f32

    cw = jnp.dtype(wx.dtype).itemsize
    ho = jnp.dtype(h1_dtype).itemsize
    w_nbuf = 1 if n_h == 1 else 2   # resident weights need no double buffer

    # Per-step VMEM footprint estimate -> scoped VMEM limit with headroom.
    act_bytes = 2 * tb * (dp * cw + hk * cw + th * 4)
    w_bytes = w_nbuf * ((3 * dp + 2 * hk) * th * cw + 2 * th * 4)
    out_bytes = 2 * tb * th * (ho + 4)
    est = act_bytes + w_bytes + out_bytes
    vmem_limit = int(min(max(2 * est, 32 * _MIB), 96 * _MIB))

    flops = 2 * bp * hp * (3 * dp + 2 * hk) + 8 * bp * hp
    transcendentals = 4 * bp * hp                       # 2x sigmoid + 2x tanh
    bytes_accessed = int(xp.size * xp.dtype.itemsize
                         + h0p.size * h0p.dtype.itemsize
                         + c0p.size * 4
                         + wx.size * cw + wh.size * cw + b.size * 4
                         + bp * hp * (4 + ho))

    h1p, c1p = pl.pallas_call(
        _ran_cell_kernel,
        out_shape=(jax.ShapeDtypeStruct((bp, hp), h1_dtype),
                   jax.ShapeDtypeStruct((bp, hp), jnp.float32)),
        grid=(n_b, n_h),
        in_specs=[
            pl.BlockSpec((tb, dp), lambda ib, jh: (ib, 0)),    # x
            pl.BlockSpec((tb, hk), lambda ib, jh: (ib, 0)),    # h0
            pl.BlockSpec((tb, th), lambda ib, jh: (ib, jh)),   # c0
            _maybe_buffered_spec((3, dp, th), lambda ib, jh: (0, 0, jh), w_nbuf),
            _maybe_buffered_spec((2, hk, th), lambda ib, jh: (0, 0, jh), w_nbuf),
            _maybe_buffered_spec((2, 1, th), lambda ib, jh: (0, 0, jh), w_nbuf),
        ],
        out_specs=(
            pl.BlockSpec((tb, th), lambda ib, jh: (ib, jh)),   # h1 (lane-dense)
            pl.BlockSpec((tb, th), lambda ib, jh: (ib, jh)),   # c1 (lane-dense)
        ),
        compiler_params=pltpu.CompilerParams(
            dimension_semantics=("parallel", "parallel"),
            vmem_limit_bytes=vmem_limit),
        cost_estimate=pl.CostEstimate(flops=flops,
                                      transcendentals=transcendentals,
                                      bytes_accessed=bytes_accessed),
    )(xp, h0p, c0p, wx, wh, b)

    return h1p[:batch, :hidden], c1p[:batch, :hidden]


# --------------------------------------------------------------------------
# Reference + init (mirror the PyTorch module)
# --------------------------------------------------------------------------
def init_ran_params(key, input_size, hidden_size):
    """Deterministic init mirroring RANCell.reset_parameters()."""
    stdv = 1.0 / math.sqrt(hidden_size)
    k_ih, k_hh, k_ic = jax.random.split(key, 3)
    weight_ih = jax.random.uniform(k_ih, (input_size, 2 * hidden_size),
                                   jnp.float32, -stdv, stdv)
    weight_hh = jax.random.uniform(k_hh, (hidden_size, 2 * hidden_size),
                                   jnp.float32, -stdv, stdv)
    weight_ic = jax.random.uniform(k_ic, (input_size, hidden_size),
                                   jnp.float32, -stdv, stdv)
    bias_h = jnp.zeros((2 * hidden_size,), jnp.float32)  # init.constant(..., 0)
    return weight_ih, weight_hh, weight_ic, bias_h


def ran_cell_reference(input_, h_0, c_0, weight_ih, weight_hh, weight_ic, bias_h):
    """Pure-JAX reference (matches the PyTorch forward)."""
    wh_b = bias_h[None, :] + h_0 @ weight_hh
    wi = input_ @ weight_ih
    wc = input_ @ weight_ic
    hidden = h_0.shape[1]
    gates = wh_b + wi
    f, i = gates[:, :hidden], gates[:, hidden:]
    c_1 = jax.nn.sigmoid(i) * wc + jax.nn.sigmoid(f) * jnp.tanh(c_0)
    h_1 = jnp.tanh(c_1)
    return h_1, c_1


if __name__ == "__main__":
    batch, input_size, hidden_size = 8, 16, 32

    key = jax.random.PRNGKey(0)
    k_params, k_x, k_h, k_c = jax.random.split(key, 4)

    weight_ih, weight_hh, weight_ic, bias_h = init_ran_params(
        k_params, input_size, hidden_size)

    x = jax.random.normal(k_x, (batch, input_size), jnp.float32)
    h_0 = jax.random.normal(k_h, (batch, hidden_size), jnp.float32)
    c_0 = jax.random.normal(k_c, (batch, hidden_size), jnp.float32)

    h_ref, c_ref = ran_cell_reference(x, h_0, c_0, weight_ih, weight_hh,
                                      weight_ic, bias_h)

    # f32 compute path: must match the reference tightly.
    params_f32 = pack_ran_params(weight_ih, weight_hh, weight_ic, bias_h,
                                 compute_dtype=jnp.float32)
    h_f32, c_f32 = ran_cell_forward(x, h_0, c_0, params_f32)
    jax.block_until_ready((h_f32, c_f32))
    assert jnp.allclose(h_f32, h_ref, atol=1e-5, rtol=1e-5)
    assert jnp.allclose(c_f32, c_ref, atol=1e-5, rtol=1e-5)

    # Default bf16-MXU path (f32 accumulate, c kept f32): looser tolerance.
    params_bf16 = pack_ran_params(weight_ih, weight_hh, weight_ic, bias_h,
                                  compute_dtype=jnp.bfloat16)
    h_1, c_1 = ran_cell_forward(x, h_0, c_0, params_bf16)
    jax.block_until_ready((h_1, c_1))
    assert jnp.allclose(h_1, h_ref, atol=2e-2, rtol=2e-2)
    assert jnp.allclose(c_1, c_ref, atol=2e-2, rtol=2e-2)

    print("KERNEL_OK")
</pallas_src>

<mosaic_0001>
module attributes {stable_mosaic.version = 11 : i64} {
  func.func @_ran_cell_kernel(%arg0: i32, %arg1: i32, %arg2: memref<8x128xf32, #tpu.memory_space<vmem>>, %arg3: memref<8x128xf32, #tpu.memory_space<vmem>>, %arg4: memref<8x128xf32, #tpu.memory_space<vmem>>, %arg5: memref<3x128x128xf32, #tpu.memory_space<vmem>>, %arg6: memref<2x128x128xf32, #tpu.memory_space<vmem>>, %arg7: memref<2x1x128xf32, #tpu.memory_space<vmem>>, %arg8: memref<8x128xf32, #tpu.memory_space<vmem>>, %arg9: memref<8x128xf32, #tpu.memory_space<vmem>>) attributes {dimension_semantics = [#tpu.dimension_semantics<parallel>, #tpu.dimension_semantics<parallel>], iteration_bounds = array<i64: 1, 1>, scalar_prefetch = 0 : i64, scratch_operands = 0 : i64, tpu.core_type = #tpu.core_type<tc>, window_params = [{transform_indices = @transform_0, window_bounds = array<i64: 8, 128>}, {transform_indices = @transform_1, window_bounds = array<i64: 8, 128>}, {transform_indices = @transform_2, window_bounds = array<i64: 8, 128>}, {pipeline_mode = #tpu.pipeline_mode<synchronous>, transform_indices = @transform_3, window_bounds = array<i64: 3, 128, 128>}, {pipeline_mode = #tpu.pipeline_mode<synchronous>, transform_indices = @transform_4, window_bounds = array<i64: 2, 128, 128>}, {pipeline_mode = #tpu.pipeline_mode<synchronous>, transform_indices = @transform_5, window_bounds = array<i64: 2, 1, 128>}, {transform_indices = @transform_6, window_bounds = array<i64: 8, 128>}, {transform_indices = @transform_7, window_bounds = array<i64: 8, 128>}]} {
    %c0 = arith.constant 0 : index
    %c0_0 = arith.constant 0 : index
    %0 = vector.load %arg2[%c0, %c0_0] : memref<8x128xf32, #tpu.memory_space<vmem>>, vector<8x128xf32>
    %c0_1 = arith.constant 0 : index
    %c0_2 = arith.constant 0 : index
    %1 = vector.load %arg3[%c0_1, %c0_2] : memref<8x128xf32, #tpu.memory_space<vmem>>, vector<8x128xf32>
    %c0_3 = arith.constant 0 : index
    %c0_4 = arith.constant 0 : index
    %c0_5 = arith.constant 0 : index
    %2 = vector.load %arg5[%c0_3, %c0_4, %c0_5] : memref<3x128x128xf32, #tpu.memory_space<vmem>>, vector<1x128x128xf32>
    %3 = vector.shape_cast %2 : vector<1x128x128xf32> to vector<128x128xf32>
    %cst = arith.constant dense<0.000000e+00> : vector<8x128xf32>
    %4 = tpu.matmul %0, %3, %cst {dimension_numbers = #tpu.dot_dimension_numbers<[1], [0], [0], [1], [0, 0, 1, 1], [], []>} : vector<8x128xf32>, vector<128x128xf32>, vector<8x128xf32> -> vector<8x128xf32>
    %c0_6 = arith.constant 0 : index
    %c0_7 = arith.constant 0 : index
    %c0_8 = arith.constant 0 : index
    %5 = vector.load %arg6[%c0_6, %c0_7, %c0_8] : memref<2x128x128xf32, #tpu.memory_space<vmem>>, vector<1x128x128xf32>
    %6 = vector.shape_cast %5 : vector<1x128x128xf32> to vector<128x128xf32>
    %cst_9 = arith.constant dense<0.000000e+00> : vector<8x128xf32>
    %7 = tpu.matmul %1, %6, %cst_9 {dimension_numbers = #tpu.dot_dimension_numbers<[1], [0], [0], [1], [0, 0, 1, 1], [], []>} : vector<8x128xf32>, vector<128x128xf32>, vector<8x128xf32> -> vector<8x128xf32>
    %8 = arith.addf %4, %7 : vector<8x128xf32>
    %c0_10 = arith.constant 0 : index
    %c0_11 = arith.constant 0 : index
    %c0_12 = arith.constant 0 : index
    %9 = vector.load %arg7[%c0_10, %c0_11, %c0_12] : memref<2x1x128xf32, #tpu.memory_space<vmem>>, vector<1x1x128xf32>
    %10 = vector.shape_cast %9 : vector<1x1x128xf32> to vector<1x128xf32>
    %11 = vector.broadcast %10 : vector<1x128xf32> to vector<8x128xf32>
    %12 = arith.addf %8, %11 : vector<8x128xf32>
    %c1 = arith.constant 1 : index
    %c0_13 = arith.constant 0 : index
    %c0_14 = arith.constant 0 : index
    %13 = vector.load %arg5[%c1, %c0_13, %c0_14] : memref<3x128x128xf32, #tpu.memory_space<vmem>>, vector<1x128x128xf32>
    %14 = vector.shape_cast %13 : vector<1x128x128xf32> to vector<128x128xf32>
    %cst_15 = arith.constant dense<0.000000e+00> : vector<8x128xf32>
    %15 = tpu.matmul %0, %14, %cst_15 {dimension_numbers = #tpu.dot_dimension_numbers<[1], [0], [0], [1], [0, 0, 1, 1], [], []>} : vector<8x128xf32>, vector<128x128xf32>, vector<8x128xf32> -> vector<8x128xf32>
    %c1_16 = arith.constant 1 : index
    %c0_17 = arith.constant 0 : index
    %c0_18 = arith.constant 0 : index
    %16 = vector.load %arg6[%c1_16, %c0_17, %c0_18] : memref<2x128x128xf32, #tpu.memory_space<vmem>>, vector<1x128x128xf32>
    %17 = vector.shape_cast %16 : vector<1x128x128xf32> to vector<128x128xf32>
    %cst_19 = arith.constant dense<0.000000e+00> : vector<8x128xf32>
    %18 = tpu.matmul %1, %17, %cst_19 {dimension_numbers = #tpu.dot_dimension_numbers<[1], [0], [0], [1], [0, 0, 1, 1], [], []>} : vector<8x128xf32>, vector<128x128xf32>, vector<8x128xf32> -> vector<8x128xf32>
    %19 = arith.addf %15, %18 : vector<8x128xf32>
    %c1_20 = arith.constant 1 : index
    %c0_21 = arith.constant 0 : index
    %c0_22 = arith.constant 0 : index
    %20 = vector.load %arg7[%c1_20, %c0_21, %c0_22] : memref<2x1x128xf32, #tpu.memory_space<vmem>>, vector<1x1x128xf32>
    %21 = vector.shape_cast %20 : vector<1x1x128xf32> to vector<1x128xf32>
    %22 = vector.broadcast %21 : vector<1x128xf32> to vector<8x128xf32>
    %23 = arith.addf %19, %22 : vector<8x128xf32>
    %c2 = arith.constant 2 : index
    %c0_23 = arith.constant 0 : index
    %c0_24 = arith.constant 0 : index
    %24 = vector.load %arg5[%c2, %c0_23, %c0_24] : memref<3x128x128xf32, #tpu.memory_space<vmem>>, vector<1x128x128xf32>
    %25 = vector.shape_cast %24 : vector<1x128x128xf32> to vector<128x128xf32>
    %cst_25 = arith.constant dense<0.000000e+00> : vector<8x128xf32>
    %26 = tpu.matmul %0, %25, %cst_25 {dimension_numbers = #tpu.dot_dimension_numbers<[1], [0], [0], [1], [0, 0, 1, 1], [], []>} : vector<8x128xf32>, vector<128x128xf32>, vector<8x128xf32> -> vector<8x128xf32>
    %c0_26 = arith.constant 0 : index
    %c0_27 = arith.constant 0 : index
    %27 = vector.load %arg4[%c0_26, %c0_27] : memref<8x128xf32, #tpu.memory_space<vmem>>, vector<8x128xf32>
    %28 = arith.negf %23 : vector<8x128xf32>
    %29 = math.exp %28 : vector<8x128xf32>
    %cst_28 = arith.constant 1.000000e+00 : f32
    %30 = vector.broadcast %cst_28 : f32 to vector<8x128xf32>
    %31 = arith.addf %30, %29 : vector<8x128xf32>
    %32 = arith.divf %30, %31 : vector<8x128xf32>
    %33 = arith.mulf %32, %26 : vector<8x128xf32>
    %34 = arith.negf %12 : vector<8x128xf32>
    %35 = math.exp %34 : vector<8x128xf32>
    %cst_29 = arith.constant 1.000000e+00 : f32
    %36 = vector.broadcast %cst_29 : f32 to vector<8x128xf32>
    %37 = arith.addf %36, %35 : vector<8x128xf32>
    %38 = arith.divf %36, %37 : vector<8x128xf32>
    %39 = math.tanh %27 : vector<8x128xf32>
    %40 = arith.mulf %38, %39 : vector<8x128xf32>
    %41 = arith.addf %33, %40 : vector<8x128xf32>
    %42 = math.tanh %41 : vector<8x128xf32>
    %c0_30 = arith.constant 0 : index
    %c0_31 = arith.constant 0 : index
    %43 = vector.load %arg9[%c0_30, %c0_31] : memref<8x128xf32, #tpu.memory_space<vmem>>, vector<8x128xf32>
    tpu.vector_store %arg9[%c0_30, %c0_31], %41 {strides = array<i32>} : memref<8x128xf32, #tpu.memory_space<vmem>>, vector<8x128xf32>,
    %c0_32 = arith.constant 0 : index
    %c0_33 = arith.constant 0 : index
    %44 = vector.load %arg8[%c0_32, %c0_33] : memref<8x128xf32, #tpu.memory_space<vmem>>, vector<8x128xf32>
    tpu.vector_store %arg8[%c0_32, %c0_33], %42 {strides = array<i32>} : memref<8x128xf32, #tpu.memory_space<vmem>>, vector<8x128xf32>,
    return
  }
  func.func @transform_0(%arg0: i32, %arg1: i32) -> (i32, i32) {
    %c0_i32 = arith.constant 0 : i32
    %c0_i32_0 = arith.constant 0 : i32
    return %arg0, %c0_i32 : i32, i32
  }
  func.func @transform_1(%arg0: i32, %arg1: i32) -> (i32, i32) {
    %c0_i32 = arith.constant 0 : i32
    %c0_i32_0 = arith.constant 0 : i32
    return %arg0, %c0_i32 : i32, i32
  }
  func.func @transform_2(%arg0: i32, %arg1: i32) -> (i32, i32) {
    %c0_i32 = arith.constant 0 : i32
    return %arg0, %arg1 : i32, i32
  }
  func.func @transform_3(%arg0: i32, %arg1: i32) -> (i32, i32, i32) {
    %c0_i32 = arith.constant 0 : i32
    %c0_i32_0 = arith.constant 0 : i32
    %c0_i32_1 = arith.constant 0 : i32
    return %c0_i32, %c0_i32_0, %arg1 : i32, i32, i32
  }
  func.func @transform_4(%arg0: i32, %arg1: i32) -> (i32, i32, i32) {
    %c0_i32 = arith.constant 0 : i32
    %c0_i32_0 = arith.constant 0 : i32
    %c0_i32_1 = arith.constant 0 : i32
    return %c0_i32, %c0_i32_0, %arg1 : i32, i32, i32
  }
  func.func @transform_5(%arg0: i32, %arg1: i32) -> (i32, i32, i32) {
    %c0_i32 = arith.constant 0 : i32
    %c0_i32_0 = arith.constant 0 : i32
    %c0_i32_1 = arith.constant 0 : i32
    return %c0_i32, %c0_i32_0, %arg1 : i32, i32, i32
  }
  func.func @transform_6(%arg0: i32, %arg1: i32) -> (i32, i32) {
    %c0_i32 = arith.constant 0 : i32
    return %arg0, %arg1 : i32, i32
  }
  func.func @transform_7(%arg0: i32, %arg1: i32) -> (i32, i32) {
    %c0_i32 = arith.constant 0 : i32
    return %arg0, %arg1 : i32, i32
  }
}

</mosaic_0001>

<bundles_post_ra>
// kernel: tpu_custom_call.1
= control target key start
LH: loop header
LB: loop body
LE: loop exit
PB: predicated region body
PF: predicated region fallthrough
CT: control target
= control target key end

     0   :  { %13 = vsyncpa [#allocation3], 0  ;;  %s656_s0 = inlined_call_operand.hbm [shape: f32[8,128], index: 0, kind: input, shape index: {}]   ;;  %s657_s1 = inlined_call_operand.hbm [shape: f32[8,128], index: 1, kind: input, shape index: {}]   ;;  %s658_s2 = inlined_call_operand.hbm [shape: f32[8,128], index: 2, kind: input, shape index: {}]   ;;  %s659_s3 = inlined_call_operand.hbm [shape: f32[3,128,128], index: 3, kind: input, shape index: {}]   ;;  %s660_s4 = inlined_call_operand.hbm [shape: f32[2,128,128], index: 4, kind: input, shape index: {}]   ;;  %s661_s5 = inlined_call_operand.vmem [shape: f32[2,1,128], index: 5, kind: input, shape index: {}]   ;;  %s662_s6 = inlined_call_operand.hbm [shape: f32[8,128], index: 6, kind: output, shape index: {0}]   ;;  %s663_s7 = inlined_call_operand.hbm [shape: f32[8,128], index: 7, kind: output, shape index: {1}]  }
   0x1   :  { %14 = vsyncpa [#allocation6], 0 }
   0x2   :  { %15 = vsyncpa [#allocation9], 0 }
   0x3   :  { %16 = vsyncpa [#allocation4], 0  ;;  %s34_s26 = sshll.u32 %s657_s1, 4  ;;  %s35_s26 = int_to_ptr.hbm [resolvable:$true] %s34_s26 }
   0x4   :  { %17 = vsyncpa [#allocation13], 0  ;;  %s580_s27 = smov [#allocation5]   ;;  %s55_s8 = sshll.u32 %s659_s3, 4  ;;  %s56_s8 = int_to_ptr.hbm [resolvable:$true] %s55_s8 }
   0x5   :  { %s36_s28 = sshll.u32 %s580_s27, 4  ;;  %s581_s9 = smov [#allocation8]   ;;  %s37_s28 = int_to_ptr.vmem [resolvable:$true] %s36_s28 }
   0x6   :  { %39 = dma.hbm_to_vmem [thread:$0]  %s35_s26, 128, %s37_s28, [#allocation6]  }
   0x7   :  { %s57_s10 = sshll.u32 %s581_s9, 4  ;;  %s582_s11 = smov 128   ;;  %s58_s10 = int_to_ptr.vmem [resolvable:$true] %s57_s10 }
   0x8   :  { %s583_s12 = smov 8   ;;  %s23_s1 = sshll.u32 %s656_s0, 4  ;;  %s24_s1 = int_to_ptr.hbm [resolvable:$true] %s23_s1 }
   0x9   :  { %63 = dma.hbm_to_vmem [thread:$0]  %s56_s8, 6144, %s58_s10, [#allocation9], %s582_s11, %s582_s11, %s583_s12  }
   0xa   :  { %s584_s15 = smov [#allocation2]   ;;  %s45_s3 = sshll.u32 %s658_s2, 4  ;;  %s46_s3 = int_to_ptr.hbm [resolvable:$true] %s45_s3 }
   0xb   :  { %s25_s16 = sshll.u32 %s584_s15, 4  ;;  %s585_s19 = smov [#allocation7]   ;;  %s26_s16 = int_to_ptr.vmem [resolvable:$true] %s25_s16 }
   0xc   :  { %28 = dma.hbm_to_vmem [thread:$0]  %s24_s1, 128, %s26_s16, [#allocation3]  }
   0xd   :  { %s47_s20 = sshll.u32 %s585_s19, 4  ;;  %s68_s23 = sshll.u32 %s660_s4, 4  ;;  %s48_s20 = int_to_ptr.vmem [resolvable:$true] %s47_s20  ;;  %s69_s23 = int_to_ptr.hbm [resolvable:$true] %s68_s23 }
   0xe   :  { %50 = dma.hbm_to_vmem [thread:$0]  %s46_s3, 128, %s48_s20, [#allocation6]  }
   0xf   :  { %s586_s0 = smov [#allocation10]  }
  0x10   :  { %s70_s24 = sshll.u32 %s586_s0, 4  ;;  %s71_s24 = int_to_ptr.vmem [resolvable:$true] %s70_s24 }
  0x11   :  { %76 = dma.hbm_to_vmem [thread:$0]  %s69_s23, 4096, %s71_s24, [#allocation9], %s582_s11, %s582_s11, %s583_s12  }
  0x12   :  { %570 = dma.done.wait [#allocation3], 128  }
  0x13   :  { %571 = vsyncadd [#allocation3], 4294967168 }
  0x14   :  { %572 = dma.done.wait [#allocation6], 256  }
  0x15   :  { %573 = vsyncadd [#allocation6], 4294967040 }
  0x16   :  { %574 = dma.done.wait [#allocation9], 10240  }
  0x17   :  { %575 = vsyncadd [#allocation9], 4294957056  ;;  %v132_v0 = vld [vmem:[#allocation10 + $0x78] sm:$0xff]  ;;  %v131_v4 = vld [vmem:[#allocation10 + $0x70] sm:$0xff]  ;;  %s359_s30 = sshll.u32 %s663_s7, 4  ;;  %s588_s8 = smov [#allocation11]   ;;  %s360_s30 = int_to_ptr.hbm [resolvable:$true] %s359_s30 }
  0x18   :  { %v116_v1 = vld [vmem:[#allocation8 + $0x78] sm:$0xff]  ;;  %133 = vmatpush.msra.mxu0 %v132_v0  ;;  %v115_v5 = vld [vmem:[#allocation8 + $0x70] sm:$0xff]  ;;  %v130_v8 = vld [vmem:[#allocation10 + $0x68] sm:$0xff]  ;;  %s346_s9 = sshll.u32 %s588_s8, 4  ;;  %s348_s12 = sshll.u32 %s662_s6, 4  ;;  %s347_s9 = int_to_ptr.vmem [resolvable:$true] %s346_s9  ;;  %s349_s12 = int_to_ptr.hbm [resolvable:$true] %s348_s12 }
  0x19   :  { %v211_v2 = vld [vmem:[#allocation10 + $0xf8] sm:$0xff]  ;;  %153 = vmatpush.msra.mxu1 %v116_v1  ;;  %v210_v6 = vld [vmem:[#allocation10 + $0xf0] sm:$0xff]  ;;  %v114_v9 = vld [vmem:[#allocation8 + $0x68] sm:$0xff] }
  0x1a   :  { %v194_v3 = vld [vmem:[#allocation8 + $0xf8] sm:$0xff]  ;;  %212 = vmatpush.msra.mxu2 %v211_v2  ;;  %v193_v7 = vld [vmem:[#allocation8 + $0xf0] sm:$0xff]  ;;  %134 = vmatpush.msra.mxu0 %v131_v4  ;;  %v209_v10 = vld [vmem:[#allocation10 + $0xe8] sm:$0xff] }
  0x1b   :  { %232 = vmatpush.msra.mxu3 %v194_v3  ;;  %154 = vmatpush.msra.mxu1 %v115_v5  ;;  %v192_v11 = vld [vmem:[#allocation8 + $0xe8] sm:$0xff]  ;;  %v129_v12 = vld [vmem:[#allocation10 + $0x60] sm:$0xff]  ;;  %v128_v16 = vld [vmem:[#allocation10 + $0x58] sm:$0xff] }
  0x1c   :  { %213 = vmatpush.msra.mxu2 %v210_v6  ;;  %v113_v13 = vld [vmem:[#allocation8 + $0x60] sm:$0xff]  ;;  %135 = vmatpush.msra.mxu0 %v130_v8  ;;  %v112_v17 = vld [vmem:[#allocation8 + $0x58] sm:$0xff]  ;;  %v127_v20 = vld [vmem:[#allocation10 + $0x50] sm:$0xff] }
  0x1d   :  { %233 = vmatpush.msra.mxu3 %v193_v7  ;;  %155 = vmatpush.msra.mxu1 %v114_v9  ;;  %v208_v14 = vld [vmem:[#allocation10 + $0xe0] sm:$0xff]  ;;  %v207_v18 = vld [vmem:[#allocation10 + $0xd8] sm:$0xff]  ;;  %v111_v21 = vld [vmem:[#allocation8 + $0x50] sm:$0xff] }
  0x1e   :  { %v191_v15 = vld [vmem:[#allocation8 + $0xe0] sm:$0xff]  ;;  %214 = vmatpush.msra.mxu2 %v209_v10  ;;  %136 = vmatpush.msra.mxu0 %v129_v12  ;;  %v190_v19 = vld [vmem:[#allocation8 + $0xd8] sm:$0xff]  ;;  %v206_v22 = vld [vmem:[#allocation10 + $0xd0] sm:$0xff] }
  0x1f   :  { %234 = vmatpush.msra.mxu3 %v192_v11  ;;  %156 = vmatpush.msra.mxu1 %v113_v13  ;;  %v189_v23 = vld [vmem:[#allocation8 + $0xd0] sm:$0xff]  ;;  %v126_v24 = vld [vmem:[#allocation10 + $0x48] sm:$0xff]  ;;  %v125_v28 = vld [vmem:[#allocation10 + $0x40] sm:$0xff] }
  0x20   :  { %215 = vmatpush.msra.mxu2 %v208_v14  ;;  %137 = vmatpush.msra.mxu0 %v128_v16  ;;  %v110_v25 = vld [vmem:[#allocation8 + $0x48] sm:$0xff]  ;;  %v109_v29 = vld [vmem:[#allocation8 + $0x40] sm:$0xff]  ;;  %v124_v32 = vld [vmem:[#allocation10 + $0x38] sm:$0xff] }
  0x21   :  { %235 = vmatpush.msra.mxu3 %v191_v15  ;;  %157 = vmatpush.msra.mxu1 %v112_v17  ;;  %v205_v26 = vld [vmem:[#allocation10 + $0xc8] sm:$0xff]  ;;  %v204_v30 = vld [vmem:[#allocation10 + $0xc0] sm:$0xff]  ;;  %v108_v33 = vld [vmem:[#allocation8 + $0x38] sm:$0xff] }
  0x22   :  { %216 = vmatpush.msra.mxu2 %v207_v18  ;;  %138 = vmatpush.msra.mxu0 %v127_v20  ;;  %v188_v27 = vld [vmem:[#allocation8 + $0xc8] sm:$0xff]  ;;  %v187_v31 = vld [vmem:[#allocation8 + $0xc0] sm:$0xff]  ;;  %v203_v34 = vld [vmem:[#allocation10 + $0xb8] sm:$0xff] }
  0x23   :  { %236 = vmatpush.msra.mxu3 %v190_v19  ;;  %158 = vmatpush.msra.mxu1 %v111_v21  ;;  %v186_v35 = vld [vmem:[#allocation8 + $0xb8] sm:$0xff]  ;;  %v123_v36 = vld [vmem:[#allocation10 + $0x30] sm:$0xff]  ;;  %v122_v40 = vld [vmem:[#allocation10 + $0x28] sm:$0xff] }
  0x24   :  { %217 = vmatpush.msra.mxu2 %v206_v22  ;;  %139 = vmatpush.msra.mxu0 %v126_v24  ;;  %v107_v37 = vld [vmem:[#allocation8 + $0x30] sm:$0xff]  ;;  %v106_v41 = vld [vmem:[#allocation8 + $0x28] sm:$0xff]  ;;  %v121_v44 = vld [vmem:[#allocation10 + $0x20] sm:$0xff] }
  0x25   :  { %237 = vmatpush.msra.mxu3 %v189_v23  ;;  %159 = vmatpush.msra.mxu1 %v110_v25  ;;  %v202_v38 = vld [vmem:[#allocation10 + $0xb0] sm:$0xff]  ;;  %v201_v42 = vld [vmem:[#allocation10 + $0xa8] sm:$0xff]  ;;  %v105_v45 = vld [vmem:[#allocation8 + $0x20] sm:$0xff] }
  0x26   :  { %218 = vmatpush.msra.mxu2 %v205_v26  ;;  %140 = vmatpush.msra.mxu0 %v125_v28  ;;  %v185_v39 = vld [vmem:[#allocation8 + $0xb0] sm:$0xff]  ;;  %v184_v43 = vld [vmem:[#allocation8 + $0xa8] sm:$0xff]  ;;  %v200_v46 = vld [vmem:[#allocation10 + $0xa0] sm:$0xff] }
  0x27   :  { %238 = vmatpush.msra.mxu3 %v188_v27  ;;  %160 = vmatpush.msra.mxu1 %v109_v29  ;;  %v183_v47 = vld [vmem:[#allocation8 + $0xa0] sm:$0xff]  ;;  %v120_v48 = vld [vmem:[#allocation10 + $0x18] sm:$0xff]  ;;  %v119_v52 = vld [vmem:[#allocation10 + $0x10] sm:$0xff] }
  0x28   :  { %219 = vmatpush.msra.mxu2 %v204_v30  ;;  %141 = vmatpush.msra.mxu0 %v124_v32  ;;  %v104_v49 = vld [vmem:[#allocation8 + $0x18] sm:$0xff]  ;;  %v103_v53 = vld [vmem:[#allocation8 + $0x10] sm:$0xff]  ;;  %v118_v56 = vld [vmem:[#allocation10 + $0x8] sm:$0xff] }
  0x29   :  { %239 = vmatpush.msra.mxu3 %v187_v31  ;;  %161 = vmatpush.msra.mxu1 %v108_v33  ;;  %v199_v50 = vld [vmem:[#allocation10 + $0x98] sm:$0xff]  ;;  %v198_v54 = vld [vmem:[#allocation10 + $0x90] sm:$0xff]  ;;  %v102_v57 = vld [vmem:[#allocation8 + $0x8] sm:$0xff] }
  0x2a   :  { %220 = vmatpush.msra.mxu2 %v203_v34  ;;  %142 = vmatpush.msra.mxu0 %v123_v36  ;;  %v182_v51 = vld [vmem:[#allocation8 + $0x98] sm:$0xff]  ;;  %v181_v55 = vld [vmem:[#allocation8 + $0x90] sm:$0xff]  ;;  %v197_v58 = vld [vmem:[#allocation10 + $0x88] sm:$0xff] }
  0x2b   :  { %240 = vmatpush.msra.mxu3 %v186_v35  ;;  %162 = vmatpush.msra.mxu1 %v107_v37  ;;  %v180_v59 = vld [vmem:[#allocation8 + $0x88] sm:$0xff]  ;;  %v117_v60 = vld [vmem:[#allocation10] sm:$0xff]  ;;  %v100_v0 = vld [vmem:[#allocation5] sm:$0xff] }
  0x2c   :  { %221 = vmatpush.msra.mxu2 %v202_v38  ;;  %143 = vmatpush.msra.mxu0 %v122_v40  ;;  %v101_v61 = vld [vmem:[#allocation8] sm:$0xff]  ;;  %v99_v1 = vld [vmem:[#allocation2] sm:$0xff]  ;;  %v274_v2 = vld [vmem:[#allocation8 + $0x178] sm:$0xff] }
  0x2d   :  { %241 = vmatpush.msra.mxu3 %v185_v39  ;;  %163 = vmatpush.msra.mxu1 %v106_v41  ;;  %v196_v62 = vld [vmem:[#allocation10 + $0x80] sm:$0xff]  ;;  %v273_v3 = vld [vmem:[#allocation8 + $0x170] sm:$0xff]  ;;  %v272_v4 = vld [vmem:[#allocation8 + $0x168] sm:$0xff] }
  0x2e   :  { %222 = vmatpush.msra.mxu2 %v201_v42  ;;  %144 = vmatpush.msra.mxu0 %v121_v44  ;;  %v179_v63 = vld [vmem:[#allocation8 + $0x80] sm:$0xff]  ;;  %v270_v6 = vld [vmem:[#allocation8 + $0x158] sm:$0xff]  ;;  %v269_v7 = vld [vmem:[#allocation8 + $0x150] sm:$0xff] }
  0x2f   :  { %242 = vmatpush.msra.mxu3 %v184_v43  ;;  %164 = vmatpush.msra.mxu1 %v105_v45  ;;  %v271_v5 = vld [vmem:[#allocation8 + $0x160] sm:$0xff]  ;;  %v268_v8 = vld [vmem:[#allocation8 + $0x148] sm:$0xff]  ;;  %v266_v10 = vld [vmem:[#allocation8 + $0x138] sm:$0xff] }
  0x30   :  { %223 = vmatpush.msra.mxu2 %v200_v46  ;;  %145 = vmatpush.msra.mxu0 %v120_v48  ;;  %v267_v9 = vld [vmem:[#allocation8 + $0x140] sm:$0xff]  ;;  %v265_v11 = vld [vmem:[#allocation8 + $0x130] sm:$0xff]  ;;  %v264_v12 = vld [vmem:[#allocation8 + $0x128] sm:$0xff] }
  0x31   :  { %243 = vmatpush.msra.mxu3 %v183_v47  ;;  %165 = vmatpush.msra.mxu1 %v104_v49  ;;  %v263_v13 = vld [vmem:[#allocation8 + $0x120] sm:$0xff]  ;;  %v262_v14 = vld [vmem:[#allocation8 + $0x118] sm:$0xff]  ;;  %v261_v15 = vld [vmem:[#allocation8 + $0x110] sm:$0xff] }
  0x32   :  { %224 = vmatpush.msra.mxu2 %v199_v50  ;;  %146 = vmatpush.msra.mxu0 %v119_v52  ;;  %v260_v16 = vld [vmem:[#allocation8 + $0x108] sm:$0xff]  ;;  %v259_v17 = vld [vmem:[#allocation8 + $0x100] sm:$0xff]  ;;  %v295_v37 = vld [vmem:[#allocation7] sm:$0xff] }
  0x33   :  { %244 = vmatpush.msra.mxu3 %v182_v51  ;;  %166 = vmatpush.msra.mxu1 %v103_v53  ;;  %v388_v18 = vld [vmem:[%s661_s5] ss:$0 sm:$0xff]  ;;  %v389_v24 = vld [vmem:[%s661_s5 + $0x1] ss:$0 sm:$0xff]  ;;  %s587_s5 = smov [#allocation12]  }
  0x34   :  { %225 = vmatpush.msra.mxu2 %v198_v54  ;;  %147 = vmatpush.msra.mxu0 %v118_v56  ;;  %s357_s27 = sshll.u32 %s587_s5, 4  ;;  %s358_s27 = int_to_ptr.vmem [resolvable:$true] %s357_s27 }
  0x35   :  { %245 = vmatpush.msra.mxu3 %v181_v55  ;;  %167 = vmatpush.msra.mxu1 %v102_v57 }
  0x36   :  { %226 = vmatpush.msra.mxu2 %v197_v58  ;;  %148 = vmatpush.msra.mxu0 %v117_v60 }
  0x37   :  { %246 = vmatpush.msra.mxu3 %v180_v59  ;;  %168 = vmatpush.msra.mxu1 %v101_v61 }
  0x38   :  { %227 = vmatpush.msra.mxu2 %v196_v62  ;;  %149 = vmatmul.f32.vlgmr.msra.gmra.mxu0 %v100_v0 }
  0x39   :  { %247 = vmatpush.msra.mxu3 %v179_v63  ;;  %169 = vmatmul.f32.vlgmr.msra.gmra.mxu1 %v99_v1 }
  0x3a   :  { %228 = vmatmul.f32.vlgmr.msra.gmra.mxu2 %v100_v0  ;;  %248 = vmatmul.f32.vlgmr.msra.gmra.mxu3 %v99_v1 }
  0x3b   :  { %275 = vmatpush.msrb.mxu0 %v274_v2 }
  0x3d   :  { %276 = vmatpush.msrb.mxu0 %v273_v3 }
  0x3f   :  { %277 = vmatpush.msrb.mxu0 %v272_v4 }
  0x41   :  { %278 = vmatpush.msrb.mxu0 %v271_v5 }
  0x43   :  { %279 = vmatpush.msrb.mxu0 %v270_v6 }
  0x45   :  { %280 = vmatpush.msrb.mxu0 %v269_v7 }
  0x47   :  { %281 = vmatpush.msrb.mxu0 %v268_v8 }
  0x49   :  { %282 = vmatpush.msrb.mxu0 %v267_v9 }
  0x4b   :  { %283 = vmatpush.msrb.mxu0 %v266_v10 }
  0x4d   :  { %284 = vmatpush.msrb.mxu0 %v265_v11 }
  0x4f   :  { %285 = vmatpush.msrb.mxu0 %v264_v12 }
  0x51   :  { %286 = vmatpush.msrb.mxu0 %v263_v13 }
  0x53   :  { %287 = vmatpush.msrb.mxu0 %v262_v14 }
  0x55   :  { %288 = vmatpush.msrb.mxu0 %v261_v15 }
  0x57   :  { %289 = vmatpush.msrb.mxu0 %v260_v16 }
  0x59   :  { %290 = vmatpush.msrb.mxu0 %v259_v17 }
  0x5a   :  { %291 = vmatmul.f32.vlgmr.msrb.gmra.mxu0 %v99_v1 }
  0xb5   :  { %v150_v19 = vpop.f32.mrf.mxu0 }
  0xb6   :  { %v170_v20 = vpop.f32.mrf.mxu1 }
  0xb7   :  { %v171_v21 = vadd.f32 %v170_v20, %v150_v19 }
  0xb9   :  { %v177_v22 = vadd.f32 %v388_v18, %v171_v21 }
  0xbb   :  { %v378_v23 = vmul.f32 -1.442695, %v177_v22 }
  0xbd   :  { %390 = vpow2.f32 %v378_v23  ;;  %v229_v25 = vpop.f32.mrf.mxu2  ;;  %v249_v26 = vpop.f32.mrf.mxu3 }
  0xbe   :  { %v250_v27 = vadd.f32 %v249_v26, %v229_v25 }
  0xc0   :  { %v257_v28 = vadd.f32 %v389_v24, %v250_v27 }
  0xc2   :  { %v377_v29 = vmul.f32 -1.442695, %v257_v28 }
  0xc3   :  { %v391_v30 = vpop.eup %390 }
  0xc4   :  { %v319_v31 = vadd.f32 1.0, %v391_v30  ;;  %392 = vpow2.f32 %v377_v29 }
  0xc6   :  { %394 = vrcp.f32 %v319_v31  ;;  %vm325_vm0 = vweird.f32 %v319_v31  ;;  %v331_v42 = vand.u32 2147483648, %v319_v31  ;;  %v329_v44 = vand.u32 2147483647, %v319_v31 }
  0xc8   :  { %v332_v49 = vor.u32 1.1754944e-38, %v331_v42  ;;  %vm330_vm5 = vcmp.eq.f32.partialorder %v329_v44, 8.507059e+37 }
  0xca   :  { %v393_v32 = vpop.eup %392 }
  0xcb   :  { %v299_v33 = vadd.f32 1.0, %v393_v32 }
  0xcc   :  { %v395_v34 = vpop.eup %394 }
  0xcd   :  { %396 = vrcp.f32 %v299_v33  ;;  %v321_v35 = vmul.f32 %v395_v34, %v319_v31  ;;  %vm326_vm1 = vweird.f32 %v395_v34  ;;  %v311_v45 = vand.u32 2147483648, %v299_v33 }
  0xce   :  { %398 = vtanh.f32 %v295_v37  ;;  %vm327_vm2 = vmor %vm325_vm0, %vm326_vm1  ;;  %v309_v47 = vand.u32 2147483647, %v299_v33  ;;  %vm305_vm4 = vweird.f32 %v299_v33 }
  0xcf   :  { %v322_v36 = vsub.f32 1.0, %v321_v35  ;;  %v312_v53 = vor.u32 1.1754944e-38, %v311_v45 }
  0xd0   :  { %vm310_vm7 = vcmp.eq.f32.partialorder %v309_v47, 8.507059e+37 }
  0xd1   :  { %v323_v38 = vmul.f32 %v395_v34, %v322_v36 }
  0xd3   :  { %v397_v39 = vpop.eup %396  ;;  %v324_v41 = vadd.f32 %v395_v34, %v323_v38 }
  0xd4   :  { %v301_v40 = vmul.f32 %v397_v39, %v299_v33  ;;  %vm306_vm3 = vweird.f32 %v397_v39  ;;  %v399_v51 = vpop.eup %398 }
  0xd5   :  { %v328_v48 = vsel %vm327_vm2, %v395_v34, %v324_v41  ;;  %vm307_vm6 = vmor %vm305_vm4, %vm306_vm3 }
  0xd6   :  { %v302_v43 = vsub.f32 1.0, %v301_v40  ;;  %v333_v54 = vsel %vm330_vm5, %v332_v49, %v328_v48 }
  0xd7   :  { %v292_v52 = vpop.f32.mrf.mxu0  ;;  %v336_v58 = vmul.f32 %v399_v51, %v333_v54 }
  0xd8   :  { %v303_v46 = vmul.f32 %v397_v39, %v302_v43 }
  0xda   :  { %v304_v50 = vadd.f32 %v397_v39, %v303_v46 }
  0xdc   :  { %v308_v55 = vsel %vm307_vm6, %v397_v39, %v304_v50 }
  0xdd   :  { %v313_v56 = vsel %vm310_vm7, %v312_v53, %v308_v55 }
  0xde   :  { %v315_v57 = vmul.f32 %v313_v56, %v292_v52 }
  0xe0   :  { %v337_v59 = vadd.f32 %v336_v58, %v315_v57 }
  0xe2   :  { %400 = vtanh.f32 %v337_v59  ;;  %339 = vst [vmem:[#allocation12] sm:$0xff] %v337_v59 }
  0xe3   :  { %362 = dma.vmem_to_hbm [thread:$0]  %s358_s27, 128, %s360_s30, [#allocation13]  }
  0xe8   :  { %v401_v60 = vpop.eup %400 }
  0xe9   :  { %340 = vst [vmem:[#allocation11] sm:$0xff] %v401_v60 }
  0xea   :  { %351 = dma.vmem_to_hbm [thread:$0]  %s347_s9, 128, %s349_s12, [#allocation4]  }
  0xeb   :  { %576 = dma.done.wait [#allocation4], 128  }
  0xec   :  { %577 = vsyncadd [#allocation4], 4294967168 }
  0xed   :  { %578 = dma.done.wait [#allocation13], 128  }
  0xee   :  { %579 = vsyncadd [#allocation13], 4294967168 }
  0xef   :  { %371 = vsyncpa [#allocation3], 1 }
  0xf0   :  { %372 = vsyncpa [#allocation6], 1 }
  0xf1   :  { %373 = vsyncpa [#allocation9], 1 }
  0xf2   :  { %374 = vsyncpa [#allocation4], 1 }
  0xf3   :  { %375 = vsyncpa [#allocation13], 1 }

</bundles_post_ra>
